<compile_context>
chip_gen: v7x
topology: tpu7x:2x2x1
jax: 0.10.0
libtpu: 0.0.40
codegen_flags: <defaults>
</compile_context>

<pallas_src>
import jax
import jax.numpy as jnp
import numpy as np
from jax import lax
from jax.experimental import pallas as pl
from jax.experimental.pallas import tpu as pltpu

CIN, COUT = 3, 3
KH, KW = 2, 2
STRIDE = 2
PAD = 2
NTAPS = CIN * KH * KW            # 12 scalar weights per output channel


def _conv_hswish_kernel(x_ref, w_ref, b_ref, o_ref):
    # x_ref: (nb, NTAPS, SUB, 128) VMEM  dense interior tap planes
    #        tap index t = ci*(KH*KW) + kh*KW + kw
    # w_ref: (COUT, NTAPS)         SMEM
    # b_ref: (COUT,)               SMEM  (bias + 3 pre-folded)
    # o_ref: (nb, COUT, SUB, 128)  VMEM  interior output, same flat layout
    nb = x_ref.shape[0]
    sixth = jnp.float32(1.0 / 6.0)
    for n in range(nb):
        # taps outer, COUT accumulators live: each tap plane loaded once.
        x0 = x_ref[n, 0]
        acc = [b_ref[co] + w_ref[co, 0] * x0 for co in range(COUT)]
        for t in range(1, NTAPS):
            xt = x_ref[n, t]
            for co in range(COUT):
                acc[co] = acc[co] + w_ref[co, t] * xt
        for co in range(COUT):
            a = acc[co]
            # clamp_min(t2,0) * clamp_max(t2,6) / 6
            o_ref[n, co] = jnp.maximum(a, 0.0) * jnp.minimum(a, 6.0) * sixth


def _vmem_capacity_bytes():
    try:
        info = pltpu.get_tpu_info()
        return int(getattr(info, "vmem_capacity_bytes", 64 << 20))
    except Exception:
        return 64 << 20   # conservative (v7x-sized) fallback


def _pick_images_per_block(n, bytes_per_image, budget):
    """Largest divisor of n that fits the budget; keep >=2 grid steps when
    n >= 2 so v7x's two TensorCores both get work."""
    if n <= 1:
        return 1
    best = 1
    for d in range(1, n // 2 + 1):
        if n % d == 0 and 2 * d * bytes_per_image <= budget:   # double-buffered
            best = d
    return best


def conv_clamp_model(x_nchw, weight, bias):
    """x_nchw: (N, 3, H, W); weight: (3, 3, 2, 2); bias: (3,). Returns NCHW."""
    n, c, h, w = x_nchw.shape
    assert c == CIN and h % STRIDE == 0 and w % STRIDE == 0
    oh = (h + 2 * PAD - KH) // STRIDE + 1          # = h//2 + 2
    ow = (w + 2 * PAD - KW) // STRIDE + 1          # = w//2 + 2
    oh_i, ow_i = h // STRIDE, w // STRIDE          # interior output size

    x_nchw = x_nchw.astype(jnp.float32)

    # --- wrapper glue: space-to-depth of the UNPADDED input (one transpose,
    # no pad).  Interior tap planes are flattened to dense (SUB, 128) slabs.
    p_int = oh_i * ow_i
    sub = -(-p_int // 128)
    p_pad = sub * 128
    x6 = x_nchw.reshape(n, CIN, oh_i, KH, ow_i, KW)
    x_taps = jnp.transpose(x6, (0, 1, 3, 5, 2, 4)).reshape(n, NTAPS, p_int)
    if p_pad != p_int:
        x_taps = jnp.pad(x_taps, ((0, 0), (0, 0), (0, p_pad - p_int)))
    x_taps = x_taps.reshape(n, NTAPS, sub, 128)

    w_k = weight.astype(jnp.float32).reshape(COUT, NTAPS)  # [co, ci*4+kh*2+kw]
    b_k = bias.astype(jnp.float32) + 3.0                   # fold the "+3"

    # --- generation-aware block / VMEM budget (v7x: 64 MiB, v5e/v6e: 128 MiB)
    vmem_cap = _vmem_capacity_bytes()
    bytes_per_image = (NTAPS + COUT) * sub * 128 * 4
    nb = _pick_images_per_block(n, bytes_per_image, vmem_cap // 4)
    vmem_limit = int(min(vmem_cap // 2, max(16 << 20, 8 * nb * bytes_per_image)))

    interior = pl.pallas_call(
        _conv_hswish_kernel,
        out_shape=jax.ShapeDtypeStruct((n, COUT, sub, 128), jnp.float32),
        grid=(n // nb,),
        in_specs=[
            pl.BlockSpec((nb, NTAPS, sub, 128), lambda b: (b, 0, 0, 0)),
            pl.BlockSpec(memory_space=pltpu.MemorySpace.SMEM),   # weights
            pl.BlockSpec(memory_space=pltpu.MemorySpace.SMEM),   # bias + 3
        ],
        out_specs=pl.BlockSpec((nb, COUT, sub, 128), lambda b: (b, 0, 0, 0)),
        compiler_params=pltpu.CompilerParams(
            dimension_semantics=("parallel",),
            vmem_limit_bytes=vmem_limit),
    )(x_taps, w_k, b_k)

    # --- assemble full output: constant border (all its taps are pad zeros)
    # plus the kernel's interior block.
    interior = interior.reshape(n, COUT, p_pad)[:, :, :p_int]
    interior = interior.reshape(n, COUT, oh_i, ow_i)
    border = jnp.maximum(b_k, 0.0) * jnp.minimum(b_k, 6.0) * (1.0 / 6.0)
    out = jnp.broadcast_to(border.reshape(1, COUT, 1, 1), (n, COUT, oh, ow))
    out = out.at[:, :, 1:1 + oh_i, 1:1 + ow_i].set(interior)
    return out


def _reference(x_nchw, weight, bias):
    t1 = lax.conv_general_dilated(
        x_nchw, weight,
        window_strides=(STRIDE, STRIDE),
        padding=((PAD, PAD), (PAD, PAD)),
        dimension_numbers=("NCHW", "OIHW", "NCHW"),
        precision=lax.Precision.HIGHEST,
    ) + bias.reshape(1, COUT, 1, 1)
    t2 = t1 + 3.0
    return (jnp.maximum(t2, 0.0) * jnp.minimum(t2, 6.0)) / 6.0


if __name__ == "__main__":
    key = jax.random.PRNGKey(0)
    k_x, k_w, k_b = jax.random.split(key, 3)

    N, H, W = 2, 64, 64
    x = jax.random.normal(k_x, (N, CIN, H, W), dtype=jnp.float32)

    # deterministic synthetic Conv2d(3, 3, 2) parameters
    fan_in = CIN * KH * KW
    bound = 1.0 / np.sqrt(fan_in)
    weight = jax.random.uniform(k_w, (COUT, CIN, KH, KW),
                                minval=-bound, maxval=bound, dtype=jnp.float32)
    bias = jax.random.uniform(k_b, (COUT,), minval=-bound, maxval=bound,
                              dtype=jnp.float32)

    model = jax.jit(conv_clamp_model)   # fuses the wrapper layout glue
    out = jax.block_until_ready(model(x, weight, bias))
    ref = jax.block_until_ready(_reference(x, weight, bias))

    assert out.shape == ref.shape == (N, COUT, 34, 34), out.shape
    np.testing.assert_allclose(np.asarray(out), np.asarray(ref),
                               rtol=1e-5, atol=1e-5)
    print("KERNEL_OK")
</pallas_src>

<mosaic_0001>
module attributes {stable_mosaic.version = 11 : i64} {
  func.func @_conv_hswish_kernel(%arg0: i32, %arg1: memref<1x12x8x128xf32, #tpu.memory_space<vmem>>, %arg2: memref<3x12xf32, #tpu.memory_space<smem>>, %arg3: memref<3xf32, #tpu.memory_space<smem>>, %arg4: memref<1x3x8x128xf32, #tpu.memory_space<vmem>>) attributes {dimension_semantics = [#tpu.dimension_semantics<parallel>], iteration_bounds = array<i64: 2>, scalar_prefetch = 0 : i64, scratch_operands = 0 : i64, tpu.core_type = #tpu.core_type<tc>, window_params = [{transform_indices = @transform_0, window_bounds = array<i64: 1, 12, 8, 128>}, {transform_indices = @transform_1, window_bounds = array<i64: 3, 12>}, {transform_indices = @transform_2, window_bounds = array<i64: 3>}, {transform_indices = @transform_3, window_bounds = array<i64: 1, 3, 8, 128>}]} {
    %c0 = arith.constant 0 : index
    %c0_0 = arith.constant 0 : index
    %c0_1 = arith.constant 0 : index
    %c0_2 = arith.constant 0 : index
    %0 = vector.load %arg1[%c0, %c0_0, %c0_1, %c0_2] : memref<1x12x8x128xf32, #tpu.memory_space<vmem>>, vector<1x1x8x128xf32>
    %1 = vector.shape_cast %0 : vector<1x1x8x128xf32> to vector<8x128xf32>
    %c0_3 = arith.constant 0 : index
    %2 = memref.load %arg3[%c0_3] : memref<3xf32, #tpu.memory_space<smem>>
    %c0_4 = arith.constant 0 : index
    %c0_5 = arith.constant 0 : index
    %3 = memref.load %arg2[%c0_4, %c0_5] : memref<3x12xf32, #tpu.memory_space<smem>>
    %4 = vector.broadcast %3 : f32 to vector<8x128xf32>
    %5 = arith.mulf %4, %1 : vector<8x128xf32>
    %6 = vector.broadcast %2 : f32 to vector<8x128xf32>
    %7 = arith.addf %6, %5 : vector<8x128xf32>
    %c1 = arith.constant 1 : index
    %8 = memref.load %arg3[%c1] : memref<3xf32, #tpu.memory_space<smem>>
    %c1_6 = arith.constant 1 : index
    %c0_7 = arith.constant 0 : index
    %9 = memref.load %arg2[%c1_6, %c0_7] : memref<3x12xf32, #tpu.memory_space<smem>>
    %10 = vector.broadcast %9 : f32 to vector<8x128xf32>
    %11 = arith.mulf %10, %1 : vector<8x128xf32>
    %12 = vector.broadcast %8 : f32 to vector<8x128xf32>
    %13 = arith.addf %12, %11 : vector<8x128xf32>
    %c2 = arith.constant 2 : index
    %14 = memref.load %arg3[%c2] : memref<3xf32, #tpu.memory_space<smem>>
    %c2_8 = arith.constant 2 : index
    %c0_9 = arith.constant 0 : index
    %15 = memref.load %arg2[%c2_8, %c0_9] : memref<3x12xf32, #tpu.memory_space<smem>>
    %16 = vector.broadcast %15 : f32 to vector<8x128xf32>
    %17 = arith.mulf %16, %1 : vector<8x128xf32>
    %18 = vector.broadcast %14 : f32 to vector<8x128xf32>
    %19 = arith.addf %18, %17 : vector<8x128xf32>
    %c0_10 = arith.constant 0 : index
    %c1_11 = arith.constant 1 : index
    %c0_12 = arith.constant 0 : index
    %c0_13 = arith.constant 0 : index
    %20 = vector.load %arg1[%c0_10, %c1_11, %c0_12, %c0_13] : memref<1x12x8x128xf32, #tpu.memory_space<vmem>>, vector<1x1x8x128xf32>
    %21 = vector.shape_cast %20 : vector<1x1x8x128xf32> to vector<8x128xf32>
    %c0_14 = arith.constant 0 : index
    %c1_15 = arith.constant 1 : index
    %22 = memref.load %arg2[%c0_14, %c1_15] : memref<3x12xf32, #tpu.memory_space<smem>>
    %23 = vector.broadcast %22 : f32 to vector<8x128xf32>
    %24 = arith.mulf %23, %21 : vector<8x128xf32>
    %25 = arith.addf %7, %24 : vector<8x128xf32>
    %c1_16 = arith.constant 1 : index
    %c1_17 = arith.constant 1 : index
    %26 = memref.load %arg2[%c1_16, %c1_17] : memref<3x12xf32, #tpu.memory_space<smem>>
    %27 = vector.broadcast %26 : f32 to vector<8x128xf32>
    %28 = arith.mulf %27, %21 : vector<8x128xf32>
    %29 = arith.addf %13, %28 : vector<8x128xf32>
    %c2_18 = arith.constant 2 : index
    %c1_19 = arith.constant 1 : index
    %30 = memref.load %arg2[%c2_18, %c1_19] : memref<3x12xf32, #tpu.memory_space<smem>>
    %31 = vector.broadcast %30 : f32 to vector<8x128xf32>
    %32 = arith.mulf %31, %21 : vector<8x128xf32>
    %33 = arith.addf %19, %32 : vector<8x128xf32>
    %c0_20 = arith.constant 0 : index
    %c2_21 = arith.constant 2 : index
    %c0_22 = arith.constant 0 : index
    %c0_23 = arith.constant 0 : index
    %34 = vector.load %arg1[%c0_20, %c2_21, %c0_22, %c0_23] : memref<1x12x8x128xf32, #tpu.memory_space<vmem>>, vector<1x1x8x128xf32>
    %35 = vector.shape_cast %34 : vector<1x1x8x128xf32> to vector<8x128xf32>
    %c0_24 = arith.constant 0 : index
    %c2_25 = arith.constant 2 : index
    %36 = memref.load %arg2[%c0_24, %c2_25] : memref<3x12xf32, #tpu.memory_space<smem>>
    %37 = vector.broadcast %36 : f32 to vector<8x128xf32>
    %38 = arith.mulf %37, %35 : vector<8x128xf32>
    %39 = arith.addf %25, %38 : vector<8x128xf32>
    %c1_26 = arith.constant 1 : index
    %c2_27 = arith.constant 2 : index
    %40 = memref.load %arg2[%c1_26, %c2_27] : memref<3x12xf32, #tpu.memory_space<smem>>
    %41 = vector.broadcast %40 : f32 to vector<8x128xf32>
    %42 = arith.mulf %41, %35 : vector<8x128xf32>
    %43 = arith.addf %29, %42 : vector<8x128xf32>
    %c2_28 = arith.constant 2 : index
    %c2_29 = arith.constant 2 : index
    %44 = memref.load %arg2[%c2_28, %c2_29] : memref<3x12xf32, #tpu.memory_space<smem>>
    %45 = vector.broadcast %44 : f32 to vector<8x128xf32>
    %46 = arith.mulf %45, %35 : vector<8x128xf32>
    %47 = arith.addf %33, %46 : vector<8x128xf32>
    %c0_30 = arith.constant 0 : index
    %c3 = arith.constant 3 : index
    %c0_31 = arith.constant 0 : index
    %c0_32 = arith.constant 0 : index
    %48 = vector.load %arg1[%c0_30, %c3, %c0_31, %c0_32] : memref<1x12x8x128xf32, #tpu.memory_space<vmem>>, vector<1x1x8x128xf32>
    %49 = vector.shape_cast %48 : vector<1x1x8x128xf32> to vector<8x128xf32>
    %c0_33 = arith.constant 0 : index
    %c3_34 = arith.constant 3 : index
    %50 = memref.load %arg2[%c0_33, %c3_34] : memref<3x12xf32, #tpu.memory_space<smem>>
    %51 = vector.broadcast %50 : f32 to vector<8x128xf32>
    %52 = arith.mulf %51, %49 : vector<8x128xf32>
    %53 = arith.addf %39, %52 : vector<8x128xf32>
    %c1_35 = arith.constant 1 : index
    %c3_36 = arith.constant 3 : index
    %54 = memref.load %arg2[%c1_35, %c3_36] : memref<3x12xf32, #tpu.memory_space<smem>>
    %55 = vector.broadcast %54 : f32 to vector<8x128xf32>
    %56 = arith.mulf %55, %49 : vector<8x128xf32>
    %57 = arith.addf %43, %56 : vector<8x128xf32>
    %c2_37 = arith.constant 2 : index
    %c3_38 = arith.constant 3 : index
    %58 = memref.load %arg2[%c2_37, %c3_38] : memref<3x12xf32, #tpu.memory_space<smem>>
    %59 = vector.broadcast %58 : f32 to vector<8x128xf32>
    %60 = arith.mulf %59, %49 : vector<8x128xf32>
    %61 = arith.addf %47, %60 : vector<8x128xf32>
    %c0_39 = arith.constant 0 : index
    %c4 = arith.constant 4 : index
    %c0_40 = arith.constant 0 : index
    %c0_41 = arith.constant 0 : index
    %62 = vector.load %arg1[%c0_39, %c4, %c0_40, %c0_41] : memref<1x12x8x128xf32, #tpu.memory_space<vmem>>, vector<1x1x8x128xf32>
    %63 = vector.shape_cast %62 : vector<1x1x8x128xf32> to vector<8x128xf32>
    %c0_42 = arith.constant 0 : index
    %c4_43 = arith.constant 4 : index
    %64 = memref.load %arg2[%c0_42, %c4_43] : memref<3x12xf32, #tpu.memory_space<smem>>
    %65 = vector.broadcast %64 : f32 to vector<8x128xf32>
    %66 = arith.mulf %65, %63 : vector<8x128xf32>
    %67 = arith.addf %53, %66 : vector<8x128xf32>
    %c1_44 = arith.constant 1 : index
    %c4_45 = arith.constant 4 : index
    %68 = memref.load %arg2[%c1_44, %c4_45] : memref<3x12xf32, #tpu.memory_space<smem>>
    %69 = vector.broadcast %68 : f32 to vector<8x128xf32>
    %70 = arith.mulf %69, %63 : vector<8x128xf32>
    %71 = arith.addf %57, %70 : vector<8x128xf32>
    %c2_46 = arith.constant 2 : index
    %c4_47 = arith.constant 4 : index
    %72 = memref.load %arg2[%c2_46, %c4_47] : memref<3x12xf32, #tpu.memory_space<smem>>
    %73 = vector.broadcast %72 : f32 to vector<8x128xf32>
    %74 = arith.mulf %73, %63 : vector<8x128xf32>
    %75 = arith.addf %61, %74 : vector<8x128xf32>
    %c0_48 = arith.constant 0 : index
    %c5 = arith.constant 5 : index
    %c0_49 = arith.constant 0 : index
    %c0_50 = arith.constant 0 : index
    %76 = vector.load %arg1[%c0_48, %c5, %c0_49, %c0_50] : memref<1x12x8x128xf32, #tpu.memory_space<vmem>>, vector<1x1x8x128xf32>
    %77 = vector.shape_cast %76 : vector<1x1x8x128xf32> to vector<8x128xf32>
    %c0_51 = arith.constant 0 : index
    %c5_52 = arith.constant 5 : index
    %78 = memref.load %arg2[%c0_51, %c5_52] : memref<3x12xf32, #tpu.memory_space<smem>>
    %79 = vector.broadcast %78 : f32 to vector<8x128xf32>
    %80 = arith.mulf %79, %77 : vector<8x128xf32>
    %81 = arith.addf %67, %80 : vector<8x128xf32>
    %c1_53 = arith.constant 1 : index
    %c5_54 = arith.constant 5 : index
    %82 = memref.load %arg2[%c1_53, %c5_54] : memref<3x12xf32, #tpu.memory_space<smem>>
    %83 = vector.broadcast %82 : f32 to vector<8x128xf32>
    %84 = arith.mulf %83, %77 : vector<8x128xf32>
    %85 = arith.addf %71, %84 : vector<8x128xf32>
    %c2_55 = arith.constant 2 : index
    %c5_56 = arith.constant 5 : index
    %86 = memref.load %arg2[%c2_55, %c5_56] : memref<3x12xf32, #tpu.memory_space<smem>>
    %87 = vector.broadcast %86 : f32 to vector<8x128xf32>
    %88 = arith.mulf %87, %77 : vector<8x128xf32>
    %89 = arith.addf %75, %88 : vector<8x128xf32>
    %c0_57 = arith.constant 0 : index
    %c6 = arith.constant 6 : index
    %c0_58 = arith.constant 0 : index
    %c0_59 = arith.constant 0 : index
    %90 = vector.load %arg1[%c0_57, %c6, %c0_58, %c0_59] : memref<1x12x8x128xf32, #tpu.memory_space<vmem>>, vector<1x1x8x128xf32>
    %91 = vector.shape_cast %90 : vector<1x1x8x128xf32> to vector<8x128xf32>
    %c0_60 = arith.constant 0 : index
    %c6_61 = arith.constant 6 : index
    %92 = memref.load %arg2[%c0_60, %c6_61] : memref<3x12xf32, #tpu.memory_space<smem>>
    %93 = vector.broadcast %92 : f32 to vector<8x128xf32>
    %94 = arith.mulf %93, %91 : vector<8x128xf32>
    %95 = arith.addf %81, %94 : vector<8x128xf32>
    %c1_62 = arith.constant 1 : index
    %c6_63 = arith.constant 6 : index
    %96 = memref.load %arg2[%c1_62, %c6_63] : memref<3x12xf32, #tpu.memory_space<smem>>
    %97 = vector.broadcast %96 : f32 to vector<8x128xf32>
    %98 = arith.mulf %97, %91 : vector<8x128xf32>
    %99 = arith.addf %85, %98 : vector<8x128xf32>
    %c2_64 = arith.constant 2 : index
    %c6_65 = arith.constant 6 : index
    %100 = memref.load %arg2[%c2_64, %c6_65] : memref<3x12xf32, #tpu.memory_space<smem>>
    %101 = vector.broadcast %100 : f32 to vector<8x128xf32>
    %102 = arith.mulf %101, %91 : vector<8x128xf32>
    %103 = arith.addf %89, %102 : vector<8x128xf32>
    %c0_66 = arith.constant 0 : index
    %c7 = arith.constant 7 : index
    %c0_67 = arith.constant 0 : index
    %c0_68 = arith.constant 0 : index
    %104 = vector.load %arg1[%c0_66, %c7, %c0_67, %c0_68] : memref<1x12x8x128xf32, #tpu.memory_space<vmem>>, vector<1x1x8x128xf32>
    %105 = vector.shape_cast %104 : vector<1x1x8x128xf32> to vector<8x128xf32>
    %c0_69 = arith.constant 0 : index
    %c7_70 = arith.constant 7 : index
    %106 = memref.load %arg2[%c0_69, %c7_70] : memref<3x12xf32, #tpu.memory_space<smem>>
    %107 = vector.broadcast %106 : f32 to vector<8x128xf32>
    %108 = arith.mulf %107, %105 : vector<8x128xf32>
    %109 = arith.addf %95, %108 : vector<8x128xf32>
    %c1_71 = arith.constant 1 : index
    %c7_72 = arith.constant 7 : index
    %110 = memref.load %arg2[%c1_71, %c7_72] : memref<3x12xf32, #tpu.memory_space<smem>>
    %111 = vector.broadcast %110 : f32 to vector<8x128xf32>
    %112 = arith.mulf %111, %105 : vector<8x128xf32>
    %113 = arith.addf %99, %112 : vector<8x128xf32>
    %c2_73 = arith.constant 2 : index
    %c7_74 = arith.constant 7 : index
    %114 = memref.load %arg2[%c2_73, %c7_74] : memref<3x12xf32, #tpu.memory_space<smem>>
    %115 = vector.broadcast %114 : f32 to vector<8x128xf32>
    %116 = arith.mulf %115, %105 : vector<8x128xf32>
    %117 = arith.addf %103, %116 : vector<8x128xf32>
    %c0_75 = arith.constant 0 : index
    %c8 = arith.constant 8 : index
    %c0_76 = arith.constant 0 : index
    %c0_77 = arith.constant 0 : index
    %118 = vector.load %arg1[%c0_75, %c8, %c0_76, %c0_77] : memref<1x12x8x128xf32, #tpu.memory_space<vmem>>, vector<1x1x8x128xf32>
    %119 = vector.shape_cast %118 : vector<1x1x8x128xf32> to vector<8x128xf32>
    %c0_78 = arith.constant 0 : index
    %c8_79 = arith.constant 8 : index
    %120 = memref.load %arg2[%c0_78, %c8_79] : memref<3x12xf32, #tpu.memory_space<smem>>
    %121 = vector.broadcast %120 : f32 to vector<8x128xf32>
    %122 = arith.mulf %121, %119 : vector<8x128xf32>
    %123 = arith.addf %109, %122 : vector<8x128xf32>
    %c1_80 = arith.constant 1 : index
    %c8_81 = arith.constant 8 : index
    %124 = memref.load %arg2[%c1_80, %c8_81] : memref<3x12xf32, #tpu.memory_space<smem>>
    %125 = vector.broadcast %124 : f32 to vector<8x128xf32>
    %126 = arith.mulf %125, %119 : vector<8x128xf32>
    %127 = arith.addf %113, %126 : vector<8x128xf32>
    %c2_82 = arith.constant 2 : index
    %c8_83 = arith.constant 8 : index
    %128 = memref.load %arg2[%c2_82, %c8_83] : memref<3x12xf32, #tpu.memory_space<smem>>
    %129 = vector.broadcast %128 : f32 to vector<8x128xf32>
    %130 = arith.mulf %129, %119 : vector<8x128xf32>
    %131 = arith.addf %117, %130 : vector<8x128xf32>
    %c0_84 = arith.constant 0 : index
    %c9 = arith.constant 9 : index
    %c0_85 = arith.constant 0 : index
    %c0_86 = arith.constant 0 : index
    %132 = vector.load %arg1[%c0_84, %c9, %c0_85, %c0_86] : memref<1x12x8x128xf32, #tpu.memory_space<vmem>>, vector<1x1x8x128xf32>
    %133 = vector.shape_cast %132 : vector<1x1x8x128xf32> to vector<8x128xf32>
    %c0_87 = arith.constant 0 : index
    %c9_88 = arith.constant 9 : index
    %134 = memref.load %arg2[%c0_87, %c9_88] : memref<3x12xf32, #tpu.memory_space<smem>>
    %135 = vector.broadcast %134 : f32 to vector<8x128xf32>
    %136 = arith.mulf %135, %133 : vector<8x128xf32>
    %137 = arith.addf %123, %136 : vector<8x128xf32>
    %c1_89 = arith.constant 1 : index
    %c9_90 = arith.constant 9 : index
    %138 = memref.load %arg2[%c1_89, %c9_90] : memref<3x12xf32, #tpu.memory_space<smem>>
    %139 = vector.broadcast %138 : f32 to vector<8x128xf32>
    %140 = arith.mulf %139, %133 : vector<8x128xf32>
    %141 = arith.addf %127, %140 : vector<8x128xf32>
    %c2_91 = arith.constant 2 : index
    %c9_92 = arith.constant 9 : index
    %142 = memref.load %arg2[%c2_91, %c9_92] : memref<3x12xf32, #tpu.memory_space<smem>>
    %143 = vector.broadcast %142 : f32 to vector<8x128xf32>
    %144 = arith.mulf %143, %133 : vector<8x128xf32>
    %145 = arith.addf %131, %144 : vector<8x128xf32>
    %c0_93 = arith.constant 0 : index
    %c10 = arith.constant 10 : index
    %c0_94 = arith.constant 0 : index
    %c0_95 = arith.constant 0 : index
    %146 = vector.load %arg1[%c0_93, %c10, %c0_94, %c0_95] : memref<1x12x8x128xf32, #tpu.memory_space<vmem>>, vector<1x1x8x128xf32>
    %147 = vector.shape_cast %146 : vector<1x1x8x128xf32> to vector<8x128xf32>
    %c0_96 = arith.constant 0 : index
    %c10_97 = arith.constant 10 : index
    %148 = memref.load %arg2[%c0_96, %c10_97] : memref<3x12xf32, #tpu.memory_space<smem>>
    %149 = vector.broadcast %148 : f32 to vector<8x128xf32>
    %150 = arith.mulf %149, %147 : vector<8x128xf32>
    %151 = arith.addf %137, %150 : vector<8x128xf32>
    %c1_98 = arith.constant 1 : index
    %c10_99 = arith.constant 10 : index
    %152 = memref.load %arg2[%c1_98, %c10_99] : memref<3x12xf32, #tpu.memory_space<smem>>
    %153 = vector.broadcast %152 : f32 to vector<8x128xf32>
    %154 = arith.mulf %153, %147 : vector<8x128xf32>
    %155 = arith.addf %141, %154 : vector<8x128xf32>
    %c2_100 = arith.constant 2 : index
    %c10_101 = arith.constant 10 : index
    %156 = memref.load %arg2[%c2_100, %c10_101] : memref<3x12xf32, #tpu.memory_space<smem>>
    %157 = vector.broadcast %156 : f32 to vector<8x128xf32>
    %158 = arith.mulf %157, %147 : vector<8x128xf32>
    %159 = arith.addf %145, %158 : vector<8x128xf32>
    %c0_102 = arith.constant 0 : index
    %c11 = arith.constant 11 : index
    %c0_103 = arith.constant 0 : index
    %c0_104 = arith.constant 0 : index
    %160 = vector.load %arg1[%c0_102, %c11, %c0_103, %c0_104] : memref<1x12x8x128xf32, #tpu.memory_space<vmem>>, vector<1x1x8x128xf32>
    %161 = vector.shape_cast %160 : vector<1x1x8x128xf32> to vector<8x128xf32>
    %c0_105 = arith.constant 0 : index
    %c11_106 = arith.constant 11 : index
    %162 = memref.load %arg2[%c0_105, %c11_106] : memref<3x12xf32, #tpu.memory_space<smem>>
    %163 = vector.broadcast %162 : f32 to vector<8x128xf32>
    %164 = arith.mulf %163, %161 : vector<8x128xf32>
    %165 = arith.addf %151, %164 : vector<8x128xf32>
    %c1_107 = arith.constant 1 : index
    %c11_108 = arith.constant 11 : index
    %166 = memref.load %arg2[%c1_107, %c11_108] : memref<3x12xf32, #tpu.memory_space<smem>>
    %167 = vector.broadcast %166 : f32 to vector<8x128xf32>
    %168 = arith.mulf %167, %161 : vector<8x128xf32>
    %169 = arith.addf %155, %168 : vector<8x128xf32>
    %c2_109 = arith.constant 2 : index
    %c11_110 = arith.constant 11 : index
    %170 = memref.load %arg2[%c2_109, %c11_110] : memref<3x12xf32, #tpu.memory_space<smem>>
    %171 = vector.broadcast %170 : f32 to vector<8x128xf32>
    %172 = arith.mulf %171, %161 : vector<8x128xf32>
    %173 = arith.addf %159, %172 : vector<8x128xf32>
    %cst = arith.constant 0.000000e+00 : f32
    %174 = vector.broadcast %cst : f32 to vector<8x128xf32>
    %175 = arith.maximumf %165, %174 : vector<8x128xf32>
    %cst_111 = arith.constant 6.000000e+00 : f32
    %176 = vector.broadcast %cst_111 : f32 to vector<8x128xf32>
    %177 = arith.minimumf %165, %176 : vector<8x128xf32>
    %178 = arith.mulf %175, %177 : vector<8x128xf32>
    %cst_112 = arith.constant 0.166666672 : f32
    %179 = vector.broadcast %cst_112 : f32 to vector<8x128xf32>
    %180 = arith.mulf %178, %179 : vector<8x128xf32>
    %c0_113 = arith.constant 0 : index
    %c0_114 = arith.constant 0 : index
    %c0_115 = arith.constant 0 : index
    %c0_116 = arith.constant 0 : index
    %181 = vector.load %arg4[%c0_113, %c0_114, %c0_115, %c0_116] : memref<1x3x8x128xf32, #tpu.memory_space<vmem>>, vector<1x1x8x128xf32>
    %182 = vector.shape_cast %181 : vector<1x1x8x128xf32> to vector<8x128xf32>
    %183 = vector.shape_cast %180 : vector<8x128xf32> to vector<1x1x8x128xf32>
    tpu.vector_store %arg4[%c0_113, %c0_114, %c0_115, %c0_116], %183 {strides = array<i32>} : memref<1x3x8x128xf32, #tpu.memory_space<vmem>>, vector<1x1x8x128xf32>,
    %cst_117 = arith.constant 0.000000e+00 : f32
    %184 = vector.broadcast %cst_117 : f32 to vector<8x128xf32>
    %185 = arith.maximumf %169, %184 : vector<8x128xf32>
    %cst_118 = arith.constant 6.000000e+00 : f32
    %186 = vector.broadcast %cst_118 : f32 to vector<8x128xf32>
    %187 = arith.minimumf %169, %186 : vector<8x128xf32>
    %188 = arith.mulf %185, %187 : vector<8x128xf32>
    %cst_119 = arith.constant 0.166666672 : f32
    %189 = vector.broadcast %cst_119 : f32 to vector<8x128xf32>
    %190 = arith.mulf %188, %189 : vector<8x128xf32>
    %c0_120 = arith.constant 0 : index
    %c1_121 = arith.constant 1 : index
    %c0_122 = arith.constant 0 : index
    %c0_123 = arith.constant 0 : index
    %191 = vector.load %arg4[%c0_120, %c1_121, %c0_122, %c0_123] : memref<1x3x8x128xf32, #tpu.memory_space<vmem>>, vector<1x1x8x128xf32>
    %192 = vector.shape_cast %191 : vector<1x1x8x128xf32> to vector<8x128xf32>
    %193 = vector.shape_cast %190 : vector<8x128xf32> to vector<1x1x8x128xf32>
    tpu.vector_store %arg4[%c0_120, %c1_121, %c0_122, %c0_123], %193 {strides = array<i32>} : memref<1x3x8x128xf32, #tpu.memory_space<vmem>>, vector<1x1x8x128xf32>,
    %cst_124 = arith.constant 0.000000e+00 : f32
    %194 = vector.broadcast %cst_124 : f32 to vector<8x128xf32>
    %195 = arith.maximumf %173, %194 : vector<8x128xf32>
    %cst_125 = arith.constant 6.000000e+00 : f32
    %196 = vector.broadcast %cst_125 : f32 to vector<8x128xf32>
    %197 = arith.minimumf %173, %196 : vector<8x128xf32>
    %198 = arith.mulf %195, %197 : vector<8x128xf32>
    %cst_126 = arith.constant 0.166666672 : f32
    %199 = vector.broadcast %cst_126 : f32 to vector<8x128xf32>
    %200 = arith.mulf %198, %199 : vector<8x128xf32>
    %c0_127 = arith.constant 0 : index
    %c2_128 = arith.constant 2 : index
    %c0_129 = arith.constant 0 : index
    %c0_130 = arith.constant 0 : index
    %201 = vector.load %arg4[%c0_127, %c2_128, %c0_129, %c0_130] : memref<1x3x8x128xf32, #tpu.memory_space<vmem>>, vector<1x1x8x128xf32>
    %202 = vector.shape_cast %201 : vector<1x1x8x128xf32> to vector<8x128xf32>
    %203 = vector.shape_cast %200 : vector<8x128xf32> to vector<1x1x8x128xf32>
    tpu.vector_store %arg4[%c0_127, %c2_128, %c0_129, %c0_130], %203 {strides = array<i32>} : memref<1x3x8x128xf32, #tpu.memory_space<vmem>>, vector<1x1x8x128xf32>,
    return
  }
  func.func @transform_0(%arg0: i32) -> (i32, i32, i32, i32) {
    %c0_i32 = arith.constant 0 : i32
    %c0_i32_0 = arith.constant 0 : i32
    %c0_i32_1 = arith.constant 0 : i32
    %c0_i32_2 = arith.constant 0 : i32
    return %arg0, %c0_i32, %c0_i32_0, %c0_i32_1 : i32, i32, i32, i32
  }
  func.func @transform_1(%arg0: i32) -> (i32, i32) {
    %c0_i32 = arith.constant 0 : i32
    %c0_i32_0 = arith.constant 0 : i32
    %c0_i32_1 = arith.constant 0 : i32
    return %c0_i32, %c0_i32_0 : i32, i32
  }
  func.func @transform_2(%arg0: i32) -> i32 {
    %c0_i32 = arith.constant 0 : i32
    %c0_i32_0 = arith.constant 0 : i32
    return %c0_i32 : i32
  }
  func.func @transform_3(%arg0: i32) -> (i32, i32, i32, i32) {
    %c0_i32 = arith.constant 0 : i32
    %c0_i32_0 = arith.constant 0 : i32
    %c0_i32_1 = arith.constant 0 : i32
    %c0_i32_2 = arith.constant 0 : i32
    return %arg0, %c0_i32, %c0_i32_0, %c0_i32_1 : i32, i32, i32, i32
  }
}

</mosaic_0001>

<bundles_post_ra>
// kernel: conv_clamp_model.1
= control target key start
LH: loop header
LB: loop body
LE: loop exit
PB: predicated region body
PF: predicated region fallthrough
CT: control target
= control target key end

     0   :  { %8 = vsyncpa [#allocation3], 0  ;;  %s865_s0 = inlined_call_operand.vmem [shape: f32[2,12,8,128], index: 0, kind: input, shape index: {}]   ;;  %s866_s1 = inlined_call_operand.vmem [shape: f32[3,12], index: 1, kind: input, shape index: {}]   ;;  %s867_s2 = inlined_call_operand.vmem [shape: f32[3], index: 2, kind: input, shape index: {}]   ;;  %s868_s3 = inlined_call_operand.vmem [shape: f32[2,3,8,128], index: 3, kind: output, shape index: {}]  }
   0x1   :  { %9 = vsyncpa [#allocation5], 0  ;;  %s627_s12 = smov 0  }
   0x2 LB: > { %s633_s13 = sadd.s32 4294967295, %s603_s12   ;;  %p467_p0 = scmp.ge.s32.totalorder %s603_s12, 1  ;;  %s603_s12 = sphi %s627_s12, %s15_s12  }
   0x3   : > { %p114_p1 = scmp.lt.s32.totalorder %s603_s12, 3  ;;  %s127_s16 = sshll.u32 %s866_s1, 4  ;;  %s128_s16 = int_to_ptr.vmem [resolvable:$true] %s127_s16 }
   0x4   : > { %p869_p3 = scmp.eq.s32.totalorder %s633_s13, 0  ;;  %s138_s20 = sshll.u32 %s867_s2, 4  ;;  %s139_s20 = int_to_ptr.vmem [resolvable:$true] %s138_s20 }
   0x5   : > { %p640_p2 = pnand %p467_p0, %p114_p1  ;;  %s559_s22 = scalar_lea.vmem %s128_s16, 64 }
   0x6   : > { %p560_p6 = scmp.ne.s32.totalorder %s128_s16, %s559_s22  ;;  %p567_p10 = scmp.lt.s32.totalorder %s128_s16, %s128_s16 }
   0x7   : > { %s871_s17 = scalar_select %p640_p2, 1, 0 }
   0x8   : > { %p538_p4 = pneg %p640_p2  ;;  %p568_p11 = scmp.lt.s32.totalorder %s559_s22, %s559_s22 }
   0xa   : > { %p652_p5 = pnand %p869_p3, %p538_p4  ;;  %p569_p12 = por %p568_p11, %p567_p10 }
   0xc   : > { %p561_p7 = pneg %p652_p5 }
   0xe   : > { %p562_p8 = pnand %p561_p7, %p560_p6 }
  0x10   : > { %p563_p9 = pneg %p562_p8 }
  0x12   : > { %p570_p13 = pnand %p569_p12, %p563_p9 }
  0x14   : > { %573 = shalt.err (!%p570_p13)
}
  0x15   : > { %s605_s23 = smov [#allocation2]   ;;  %s574_s24 = scalar_lea.vmem %s139_s20, 16 }
  0x16   : > { %541 = dma.vmem_to_smem (!%p652_p5), %s128_s16, 64, %s605_s23, [#allocation3]  }
  0x17   : > { %p575_p0 = scmp.ne.s32.totalorder %s139_s20, %s574_s24  ;;  %p582_p3 = scmp.lt.s32.totalorder %s139_s20, %s139_s20 }
  0x18   : > { %p583_p2 = scmp.lt.s32.totalorder %s574_s24, %s574_s24 }
  0x19   : > { %p577_p1 = pnand %p575_p0, %p561_p7 }
  0x1a   : > { %p584_p6 = por %p583_p2, %p582_p3 }
  0x1b   : > { %p578_p4 = pneg %p577_p1 }
  0x1d   : > { %p585_p8 = pnand %p584_p6, %p578_p4 }
  0x1f   : > { %588 = shalt.err (!%p585_p8)
}
  0x20   : > { %s606_s25 = smov [#allocation4]   ;;  %p873_p9 = scmp.ne.s32.totalorder %s871_s17, 0 }
  0x21   : > { %544 = dma.vmem_to_smem (!%p652_p5), %s139_s20, 16, %s606_s25, [#allocation5]  }
  0x22   : > { %159 = sbr.rel (%p873_p9) target bundleno = 102 (0x66), region = 32  ;;  %p874_p10 = scmp.eq.s32.totalorder (!%p873_p9), %s633_s13, 0 }
  0x29   : > { %594 = dma.done.wait (%p874_p10), [#allocation3], 64   ;;  %p875_p11 = pmov %p874_p10 }
  0x2a   : > { %p876_p7 = pmov %p874_p10 }
  0x2b   : > { %596 = vsyncadd (%p875_p11), [#allocation3], 4294967232 }
  0x2c   : > { %598 = dma.done.wait (%p876_p7), [#allocation5], 16   ;;  %p877_p2 = pmov %p876_p7 }
  0x2e   : > { %600 = vsyncadd (%p877_p2), [#allocation5], 4294967280 }
  0x2f   : > { %169 = sfence }
  0x30   : > { %p188_p3 = scmp.lt.s32.totalorder %s633_s13, 1  ;;  %s199_s26 = sld [smem:[#allocation4]] }
  0x31   : > { %s200_s27 = sld [smem:[#allocation2]]  ;;  %s481_s28 = sld [smem:[#allocation2 + $0x1]] }
  0x32   : > { %s879_s13 = smov (!%p188_p3, %s633_s13), 1  ;;  %s485_s29 = sld [smem:[#allocation2 + $0x2]] }
  0x33   : > { %s489_s30 = sld [smem:[#allocation2 + $0x3]]  ;;  %s528_s4 = smul.u32 96, %s879_s13 }
  0x34   : > { %s677_s5 = sld [smem:[#allocation2 + $0x4]]  ;;  %s679_s6 = sld [smem:[#allocation2 + $0x5]] }
  0x35   : > { %s684_s9 = scalar_lea.vmem %s865_s0, %s528_s4  ;;  %s686_s10 = sld [smem:[#allocation2 + $0x6]] }
  0x36   : > { %v203_v0 = vstv %s199_s26  ;;  %v689_v1 = vld [vmem:[%s684_s9] sm:$0xff]  ;;  %v692_v3 = vld [vmem:[%s684_s9 + $0x8] sm:$0xff]  ;;  %s694_s11 = sld [smem:[#allocation2 + $0x7]]  ;;  %v699_v7 = vld [vmem:[%s684_s9 + $0x10] sm:$0xff]  ;;  %s704_s14 = sld [smem:[#allocation2 + $0x8]] }
  0x37   : > { %v201_v2 = vstv %s200_s27  ;;  %v220_v4 = vstv %s481_s28  ;;  %v702_v9 = vld [vmem:[%s684_s9 + $0x18] sm:$0xff]  ;;  %s706_s15 = sld [smem:[#allocation2 + $0x9]]  ;;  %s709_s16 = sld [smem:[#allocation2 + $0xa]]  ;;  %v714_v13 = vld [vmem:[%s684_s9 + $0x20] sm:$0xff] }
  0x38   : > { %v202_v5 = vmul.f32 %v201_v2, %v689_v1  ;;  %v221_v6 = vmul.f32 %v692_v3, %v220_v4  ;;  %v234_v8 = vstv %s485_s29  ;;  %s711_s17 = sld [smem:[#allocation2 + $0xb]]  ;;  %s717_s18 = sld [smem:[#allocation4 + $0x1]]  ;;  %v723_v17 = vld [vmem:[%s684_s9 + $0x28] sm:$0xff]  ;;  %v726_v18 = vld [vmem:[%s684_s9 + $0x30] sm:$0xff]  ;;  %v735_v21 = vld [vmem:[%s684_s9 + $0x38] sm:$0xff] }
  0x39   : > { %v248_v10 = vstv %s489_s30  ;;  %v235_v12 = vmul.f32 %v699_v7, %v234_v8  ;;  %s719_s19 = sld [smem:[#allocation2 + $0x80]]  ;;  %s728_s20 = sld [smem:[#allocation2 + $0x81]]  ;;  %v761_v34 = vld [vmem:[%s684_s9 + $0x40] sm:$0xff]  ;;  %v771_v38 = vld [vmem:[%s684_s9 + $0x48] sm:$0xff]  ;;  %v782_v44 = vld [vmem:[%s684_s9 + $0x50] sm:$0xff] }
  0x3a   : > { %v204_v11 = vadd.f32 %v203_v0, %v202_v5  ;;  %v262_v14 = vstv %s677_s5  ;;  %v249_v16 = vmul.f32 %v702_v9, %v248_v10  ;;  %s730_s21 = sld [smem:[#allocation2 + $0x82]]  ;;  %v276_v19 = vstv %s679_s6  ;;  %s738_s22 = sld [smem:[#allocation2 + $0x83]]  ;;  %v785_v45 = vld [vmem:[%s684_s9 + $0x58] sm:$0xff] }
  0x3b   : > { %v290_v20 = vstv %s686_s10  ;;  %s740_s23 = sld [smem:[#allocation2 + $0x84]]  ;;  %v263_v24 = vmul.f32 %v714_v13, %v262_v14  ;;  %s743_s24 = sld [smem:[#allocation2 + $0x85]]  ;;  %v277_v26 = vmul.f32 %v723_v17, %v276_v19 }
  0x3c   : > { %v222_v15 = vadd.f32 %v221_v6, %v204_v11  ;;  %v304_v22 = vstv %s694_s11  ;;  %v291_v27 = vmul.f32 %v726_v18, %v290_v20  ;;  %s748_s25 = sld [smem:[#allocation2 + $0x86]]  ;;  %s750_s26 = sld [smem:[#allocation2 + $0x87]]  ;;  %v318_v29 = vstv %s704_s14 }
  0x3d   : > { %v305_v28 = vmul.f32 %v735_v21, %v304_v22  ;;  %v332_v30 = vstv %s706_s15  ;;  %s756_s27 = sld [smem:[#allocation2 + $0x88]]  ;;  %s758_s28 = sld [smem:[#allocation4 + $0x2]]  ;;  %v346_v39 = vstv %s709_s16  ;;  %v319_v49 = vmul.f32 %v761_v34, %v318_v29 }
  0x3e   : > { %v236_v23 = vadd.f32 %v235_v12, %v222_v15  ;;  %v209_v32 = vstv %s717_s18  ;;  %s766_s29 = sld [smem:[#allocation2 + $0x100]]  ;;  %s768_s30 = sld [smem:[#allocation2 + $0x101]]  ;;  %v360_v40 = vstv %s711_s17  ;;  %v333_v51 = vmul.f32 %v771_v38, %v332_v30 }
  0x3f   : > { %v207_v31 = vstv %s719_s19  ;;  %v224_v36 = vstv %s728_s20  ;;  %s777_s4 = sld [smem:[#allocation2 + $0x102]]  ;;  %s779_s5 = sld [smem:[#allocation2 + $0x103]]  ;;  %v347_v54 = vmul.f32 %v782_v44, %v346_v39  ;;  %v361_v55 = vmul.f32 %v785_v45, %v360_v40 }
  0x40   : > { %v250_v25 = vadd.f32 %v249_v16, %v236_v23  ;;  %v208_v35 = vmul.f32 %v207_v31, %v689_v1  ;;  %v238_v37 = vstv %s730_s21  ;;  %v225_v41 = vmul.f32 %v692_v3, %v224_v36  ;;  %s790_s6 = sld [smem:[#allocation2 + $0x89]]  ;;  %s792_s7 = sld [smem:[#allocation2 + $0x104]] }
  0x41   : > { %v252_v42 = vstv %s738_s22  ;;  %v239_v47 = vmul.f32 %v699_v7, %v238_v37  ;;  %v266_v48 = vstv %s740_s23  ;;  %s796_s8 = sld [smem:[#allocation2 + $0x105]]  ;;  %v280_v57 = vstv %s743_s24  ;;  %s802_s9 = sld [smem:[#allocation2 + $0x8a]] }
  0x42   : > { %v264_v33 = vadd.f32 %v263_v24, %v250_v25  ;;  %v210_v46 = vadd.f32 %v209_v32, %v208_v35  ;;  %v253_v53 = vmul.f32 %v702_v9, %v252_v42  ;;  %v267_v56 = vmul.f32 %v714_v13, %v266_v48  ;;  %s807_s10 = sld [smem:[#allocation2 + $0x8b]]  ;;  %s812_s11 = sld [smem:[#allocation2 + $0x106]] }
  0x43   : > { %v294_v60 = vstv %s748_s25  ;;  %v308_v61 = vstv %s750_s26  ;;  %v322_v62 = vstv %s756_s27  ;;  %v215_v0 = vstv %s758_s28  ;;  %s820_s14 = sld [smem:[#allocation2 + $0x107]]  ;;  %s827_s15 = sld [smem:[#allocation2 + $0x108]] }
  0x44   : > { %v278_v43 = vadd.f32 %v277_v26, %v264_v33  ;;  %v226_v52 = vadd.f32 %v225_v41, %v210_v46  ;;  %v213_v63 = vstv %s766_s29  ;;  %v228_v2 = vstv %s768_s30  ;;  %s832_s16 = sld [smem:[#allocation2 + $0x109]]  ;;  %s529_s17 = smul.u32 24, %s879_s13 }
  0x45   : > { %v281_v6 = vmul.f32 %v723_v17, %v280_v57  ;;  %v214_v8 = vmul.f32 %v213_v63, %v689_v1  ;;  %v295_v10 = vmul.f32 %v726_v18, %v294_v60  ;;  %v229_v11 = vmul.f32 %v692_v3, %v228_v2  ;;  %s840_s18 = sld [smem:[#allocation2 + $0x10a]]  ;;  %s523_s19 = sld [smem:[#allocation2 + $0x10b]] }
  0x46   : > { %v292_v50 = vadd.f32 %v291_v27, %v278_v43  ;;  %v240_v59 = vadd.f32 %v239_v47, %v226_v52  ;;  %v242_v12 = vstv %s777_s4  ;;  %v256_v14 = vstv %s779_s5  ;;  %s848_s21 = scalar_lea.vmem %s868_s3, %s529_s17 }
  0x47   : > { %v216_v19 = vadd.f32 %v215_v0, %v214_v8  ;;  %v243_v20 = vmul.f32 %v699_v7, %v242_v12  ;;  %v309_v22 = vmul.f32 %v735_v21, %v308_v61  ;;  %v336_v23 = vstv %s790_s6 }
  0x48   : > { %v306_v58 = vadd.f32 %v305_v28, %v292_v50  ;;  %v254_v5 = vadd.f32 %v253_v53, %v240_v59  ;;  %v257_v1 = vmul.f32 %v702_v9, %v256_v14  ;;  %v270_v24 = vstv %s792_s7 }
  0x49   : > { %v230_v26 = vadd.f32 %v229_v11, %v216_v19  ;;  %v284_v27 = vstv %s796_s8  ;;  %v323_v28 = vmul.f32 %v761_v34, %v322_v62  ;;  %v350_v29 = vstv %s802_s9 }
  0x4a   : > { %v320_v4 = vadd.f32 %v319_v49, %v306_v58  ;;  %v268_v16 = vadd.f32 %v267_v56, %v254_v5  ;;  %v271_v9 = vmul.f32 %v714_v13, %v270_v24  ;;  %v337_v32 = vmul.f32 %v771_v38, %v336_v23 }
  0x4b   : > { %v244_v31 = vadd.f32 %v243_v20, %v230_v26  ;;  %v364_v33 = vstv %s807_s10  ;;  %v285_v35 = vmul.f32 %v723_v17, %v284_v27  ;;  %v298_v36 = vstv %s812_s11 }
  0x4c   : > { %v334_v15 = vadd.f32 %v333_v51, %v320_v4  ;;  %v282_v25 = vadd.f32 %v281_v6, %v268_v16  ;;  %v351_v42 = vmul.f32 %v782_v44, %v350_v29  ;;  %v312_v43 = vstv %s820_s14 }
  0x4d   : > { %v258_v41 = vadd.f32 %v257_v1, %v244_v31  ;;  %v299_v48 = vmul.f32 %v726_v18, %v298_v36  ;;  %v365_v17 = vmul.f32 %v785_v45, %v364_v33  ;;  %v326_v49 = vstv %s827_s15 }
  0x4e   : > { %v348_v3 = vadd.f32 %v347_v54, %v334_v15  ;;  %v296_v30 = vadd.f32 %v295_v10, %v282_v25  ;;  %v313_v53 = vmul.f32 %v735_v21, %v312_v43  ;;  %v340_v54 = vstv %s832_s16 }
  0x4f   : > { %v272_v47 = vadd.f32 %v271_v9, %v258_v41  ;;  %v327_v18 = vmul.f32 %v761_v34, %v326_v49  ;;  %v354_v57 = vstv %s840_s18  ;;  %v341_v60 = vmul.f32 %v771_v38, %v340_v54 }
  0x50   : > { %v362_v7 = vadd.f32 %v361_v55, %v348_v3  ;;  %v310_v40 = vadd.f32 %v309_v22, %v296_v30  ;;  %v368_v61 = vstv %s523_s19  ;;  %v355_v2 = vmul.f32 %v782_v44, %v354_v57 }
  0x51   : > { %v286_v52 = vadd.f32 %v285_v35, %v272_v47  ;;  %v369_v5 = vmul.f32 %v785_v45, %v368_v61 }
  0x52   : > { %v371_v37 = vmax.f32 %v362_v7, 0.0  ;;  %v372_v39 = vmin.f32 %v362_v7, 6.0  ;;  %v324_v46 = vadd.f32 %v323_v28, %v310_v40 }
  0x53   : > { %v300_v56 = vadd.f32 %v299_v48, %v286_v52 }
  0x54   : > { %v373_v13 = vmul.f32 %v372_v39, %v371_v37  ;;  %v338_v51 = vadd.f32 %v337_v32, %v324_v46 }
  0x55   : > { %v314_v59 = vadd.f32 %v313_v53, %v300_v56 }
  0x56   : > { %v374_v50 = vmul.f32 0.16666667, %v373_v13  ;;  %v352_v55 = vadd.f32 %v351_v42, %v338_v51 }
  0x57   : > { %v328_v0 = vadd.f32 %v327_v18, %v314_v59 }
  0x58   : > { %375 = vst [vmem:[%s848_s21] sm:$0xff] %v374_v50  ;;  %v366_v58 = vadd.f32 %v365_v17, %v352_v55 }
  0x59   : > { %v342_v4 = vadd.f32 %v341_v60, %v328_v0 }
  0x5a   : > { %v376_v62 = vmax.f32 %v366_v58, 0.0  ;;  %v377_v63 = vmin.f32 %v366_v58, 6.0 }
  0x5b   : > { %v356_v8 = vadd.f32 %v355_v2, %v342_v4 }
  0x5c   : > { %v378_v21 = vmul.f32 %v377_v63, %v376_v62 }
  0x5d   : > { %v370_v34 = vadd.f32 %v369_v5, %v356_v8 }
  0x5e   : > { %v379_v6 = vmul.f32 0.16666667, %v378_v21 }
  0x5f   : > { %v382_v10 = vmax.f32 %v370_v34, 0.0  ;;  %v383_v11 = vmin.f32 %v370_v34, 6.0 }
  0x60   : > { %524 = vst [vmem:[%s848_s21 + $0x8] sm:$0xff] %v379_v6 }
  0x61   : > { %v384_v12 = vmul.f32 %v383_v11, %v382_v10 }
  0x63   : > { %v385_v14 = vmul.f32 0.16666667, %v384_v12 }
  0x65   : > { %525 = vst [vmem:[%s848_s21 + $0x10] sm:$0xff] %v385_v14 }
  0x66 PF: > { %s15_s12 = sadd.s32 1, %s603_s12  }
  0x67   : > { %p12_p5 = scmp.ge.s32.totalorder %s15_s12, 4  }
  0x69   :  { %14 = sbr.rel (!%p12_p5) target bundleno = 2 (0x2), region = 84 }
  0x70   :  { %409 = vsyncpa [#allocation3], 1 }
  0x71   :  { %411 = vsyncpa [#allocation3 + $0x1], 1 }
  0x72   :  { %412 = vsyncpa [#allocation5], 1 }

</bundles_post_ra>
